<compile_context>
chip_gen: v7x
topology: tpu7x:2x2x1
jax: 0.10.0
libtpu: 0.0.40
codegen_flags: <defaults>
</compile_context>

<pallas_src>
import functools

import jax
import jax.numpy as jnp
from jax import lax
from jax.experimental import pallas as pl
from jax.experimental.pallas import tpu as pltpu

_LANE = 128


def _round_up(x, m):
    return (x + m - 1) // m * m


def pack_mha_params(params, *, channels, matmul_dtype=jnp.bfloat16):
    """Repack / transpose / pad the weights once (hoist out of the hot path)."""
    C = channels
    c_pad = _round_up(C, _LANE)
    qkv_pad = _round_up(3 * C, _LANE)
    # Single (C, 3C) QKV weight, padded ONCE -> (c_pad, qkv_pad).  For C=24 the
    # fused projection output is one 128-lane tile instead of three.
    wqkv = jnp.concatenate(
        [params["wq"].T, params["wk"].T, params["wv"].T], axis=1)       # (C, 3C)
    wqkv = jnp.pad(wqkv, ((0, c_pad - C), (0, qkv_pad - 3 * C)))
    wo = jnp.pad(params["wo"].T, ((0, 0), (0, c_pad - C)))              # (C, c_pad)
    bo = jnp.pad(params["bo"], (0, c_pad - C)).reshape(1, c_pad)
    return {
        "wqkv": wqkv.astype(matmul_dtype),
        "wo": wo.astype(matmul_dtype),
        "bo": bo.astype(jnp.float32),
        "c_pad": c_pad,
        "qkv_pad": qkv_pad,
    }


def _mha_kernel(*refs, num_heads, head_dim, seq_len, channels, batch_block,
                scale, has_mask, matmul_dtype, approx_recip):
    if has_mask:
        x_ref, m2d_ref, wqkv_ref, wo_ref, bo_ref, o_ref = refs
    else:
        x_ref, wqkv_ref, wo_ref, bo_ref, o_ref = refs

    n, hd, c = seq_len, head_dim, channels

    # ---- fused QKV projection: ONE (bb*N, c_pad) x (c_pad, qkv_pad) dot -----
    qkv = jnp.dot(x_ref[...], wqkv_ref[...],
                  preferred_element_type=jnp.float32)          # (bb*N, qkv_pad)

    # ---- per-(batch, head) attention core; contexts kept in registers -------
    ctx_rows = []
    for b in range(batch_block):                               # static unroll
        rs = b * n
        head_ctx = []
        for h in range(num_heads):                             # static unroll
            lo = h * hd
            qh = qkv[rs:rs + n, lo:lo + hd]                    # (N, hd)
            kh = qkv[rs:rs + n, c + lo:c + lo + hd]            # (N, hd)
            vh = qkv[rs:rs + n, 2 * c + lo:2 * c + lo + hd]    # (N, hd)

            # q @ k^T with no explicit transpose: contract last dims of both.
            s = lax.dot_general(qh, kh, (((1,), (1,)), ((), ())),
                                preferred_element_type=jnp.float32) * scale
            if has_mask:
                # torch masked_fill semantics: REPLACE masked logits by -1000.
                s = jnp.where(m2d_ref[b] == 0.0, jnp.float32(-1000.0), s)

            # f32 softmax.
            s = s - jnp.max(s, axis=-1, keepdims=True)
            p = jnp.exp(s)
            denom = jnp.sum(p, axis=-1, keepdims=True)
            if approx_recip:
                p = p * pl.reciprocal(denom, approx=True)      # EUP slot (bf16 path)
            else:
                p = p / denom                                  # exact (f32 path)

            head_ctx.append(lax.dot_general(
                p.astype(matmul_dtype), vh.astype(matmul_dtype),
                (((1,), (0,)), ((), ())),
                preferred_element_type=jnp.float32))           # (N, hd)
        ctx_rows.append(jnp.concatenate(head_ctx, axis=1))     # (N, C)

    ctx = ctx_rows[0] if batch_block == 1 else jnp.concatenate(ctx_rows, axis=0)

    # ---- single fused output projection + bias ------------------------------
    y = jnp.dot(ctx.astype(matmul_dtype), wo_ref[...],
                preferred_element_type=jnp.float32)
    o_ref[...] = (y + bo_ref[...]).astype(o_ref.dtype)


def multi_head_attention(x, params, mask=None, *, num_heads,
                         matmul_dtype=jnp.bfloat16, batch_block=1,
                         packed=None):
    """Pallas MultiHeadAttention forward.  x: (B, N, C), mask: (B, N) or None."""
    B, N, C = x.shape
    assert C % num_heads == 0
    hd = C // num_heads
    scale = float(hd) ** (-0.5)

    if packed is None:
        packed = pack_mha_params(params, channels=C, matmul_dtype=matmul_dtype)
    else:
        assert packed["wqkv"].dtype == jnp.dtype(matmul_dtype)
    c_pad = packed["c_pad"]

    bb = batch_block
    assert B % bb == 0
    grid = (B // bb,)   # bb=1 -> grid=(B,): megacore-shards batch on v7x.

    # Lane-dense, flattened input slab (C padded to c_pad with zeros).
    x2 = jnp.pad(x.reshape(B * N, C),
                 ((0, 0), (0, c_pad - C))).astype(matmul_dtype)

    has_mask = mask is not None
    inputs = [x2]
    in_specs = [pl.BlockSpec((bb * N, c_pad), lambda i: (i, 0))]
    if has_mask:
        m = mask.astype(jnp.float32)
        mask2d = m[:, :, None] * m[:, None, :]                 # (B, N, N) on host
        inputs.append(mask2d)
        in_specs.append(pl.BlockSpec((bb, N, N), lambda i: (i, 0, 0)))
    inputs += [packed["wqkv"], packed["wo"], packed["bo"]]
    in_specs += [
        pl.BlockSpec(packed["wqkv"].shape, lambda i: (0, 0)),
        pl.BlockSpec(packed["wo"].shape, lambda i: (0, 0)),
        pl.BlockSpec(packed["bo"].shape, lambda i: (0, 0)),
    ]

    kernel = functools.partial(
        _mha_kernel, num_heads=num_heads, head_dim=hd, seq_len=N,
        channels=C, batch_block=bb, scale=scale, has_mask=has_mask,
        matmul_dtype=matmul_dtype,
        approx_recip=(jnp.dtype(matmul_dtype) != jnp.dtype(jnp.float32)))

    # At these shapes VMEM is nowhere near binding; if bb is ever scaled up for
    # MXU-row utilization, budget ~40 KB/batch-elem and cap for v7x's 64 MiB
    # (or raise vmem_limit_bytes explicitly).
    out = pl.pallas_call(
        kernel,
        out_shape=jax.ShapeDtypeStruct((B * N, c_pad), jnp.float32),
        grid_spec=pltpu.PrefetchScalarGridSpec(
            num_scalar_prefetch=0,
            grid=grid,
            in_specs=in_specs,
            out_specs=pl.BlockSpec((bb * N, c_pad), lambda i: (i, 0)),
        ),
        compiler_params=pltpu.CompilerParams(
            dimension_semantics=("parallel",)),
    )(*inputs)

    return out[:, :C].reshape(B, N, C).astype(x.dtype)


def reference_mha(x, params, mask=None, *, num_heads):
    """Pure-JAX replica of the PyTorch forward (for verification)."""
    B, N, C = x.shape
    hd = C // num_heads
    scale = float(hd) ** (-0.5)
    q = x @ params["wq"].T
    k = x @ params["wk"].T
    v = x @ params["wv"].T
    q = q.reshape(B, N, num_heads, hd).transpose(0, 2, 1, 3)
    k = k.reshape(B, N, num_heads, hd).transpose(0, 2, 1, 3)
    v = v.reshape(B, N, num_heads, hd).transpose(0, 2, 1, 3)
    attn = jnp.einsum("bhnd,bhmd->bhnm", q, k) * scale
    if mask is not None:
        mask2d = mask.reshape(B, 1, N, 1) * mask.reshape(B, 1, 1, N)
        attn = jnp.where(mask2d == 0, -1000.0, attn)           # masked_fill
    attn = jax.nn.softmax(attn, axis=-1)
    out = jnp.einsum("bhnm,bhmd->bhnd", attn, v)
    out = out.transpose(0, 2, 1, 3).reshape(B, N, C)
    return out @ params["wo"].T + params["bo"]


if __name__ == "__main__":
    # Shapes consistent with the module defaults: num_heads=6, dim % 6 == 0.
    B, N, C = 2, 8, 24
    num_heads = 6

    key = jax.random.PRNGKey(0)
    kx, kq, kk, kv, ko, kb, km = jax.random.split(key, 7)

    x = jax.random.normal(kx, (B, N, C), jnp.float32)
    params = {
        "wq": 0.1 * jax.random.normal(kq, (C, C), jnp.float32),
        "wk": 0.1 * jax.random.normal(kk, (C, C), jnp.float32),
        "wv": 0.1 * jax.random.normal(kv, (C, C), jnp.float32),
        "wo": 0.1 * jax.random.normal(ko, (C, C), jnp.float32),
        "bo": 0.1 * jax.random.normal(kb, (C,), jnp.float32),
    }
    # Non-trivial 0/1 mask (same semantics as the PyTorch masked_fill path).
    mask = (jax.random.uniform(km, (B, N)) > 0.2).astype(jnp.float32)

    ref = reference_mha(x, params, mask=None, num_heads=num_heads)
    ref_m = reference_mha(x, params, mask=mask, num_heads=num_heads)

    # f32-operand path: exact masked_fill + exact softmax division.
    out = jax.block_until_ready(multi_head_attention(
        x, params, mask=None, num_heads=num_heads, matmul_dtype=jnp.float32))
    assert jnp.allclose(out, ref, atol=2e-3, rtol=2e-3), "f32 no-mask mismatch"

    out_m = jax.block_until_ready(multi_head_attention(
        x, params, mask=mask, num_heads=num_heads, matmul_dtype=jnp.float32))
    assert jnp.allclose(out_m, ref_m, atol=2e-3, rtol=2e-3), "f32 mask mismatch"

    # Single-grid-step variant (batch_block=B, v5e/v6e-style).
    out_m2 = jax.block_until_ready(multi_head_attention(
        x, params, mask=mask, num_heads=num_heads, matmul_dtype=jnp.float32,
        batch_block=B))
    assert jnp.allclose(out_m2, ref_m, atol=2e-3, rtol=2e-3), "bb=B mismatch"

    # Default bf16-operand path (MXU fast path); f32 softmax/accumulation.
    packed = pack_mha_params(params, channels=C)   # hoisted repack, reused
    out_bf = jax.block_until_ready(multi_head_attention(
        x, params, mask=mask, num_heads=num_heads, packed=packed))
    assert jnp.allclose(out_bf, ref_m, atol=5e-2, rtol=5e-2), "bf16 mask mismatch"

    out_bf_nm = jax.block_until_ready(multi_head_attention(
        x, params, mask=None, num_heads=num_heads, packed=packed))
    assert jnp.allclose(out_bf_nm, ref, atol=5e-2, rtol=5e-2), \
        "bf16 no-mask mismatch"

    print("KERNEL_OK")
</pallas_src>

<mosaic_0001>
module attributes {stable_mosaic.version = 11 : i64} {
  func.func @_mha_kernel(%arg0: i32, %arg1: memref<8x128xf32, #tpu.memory_space<vmem>>, %arg2: memref<128x128xf32, #tpu.memory_space<vmem>>, %arg3: memref<24x128xf32, #tpu.memory_space<vmem>>, %arg4: memref<1x128xf32, #tpu.memory_space<vmem>>, %arg5: memref<8x128xf32, #tpu.memory_space<vmem>>) attributes {dimension_semantics = [#tpu.dimension_semantics<parallel>], iteration_bounds = array<i64: 2>, scalar_prefetch = 0 : i64, scratch_operands = 0 : i64, tpu.core_type = #tpu.core_type<tc>, window_params = [{transform_indices = @transform_0, window_bounds = array<i64: 8, 128>}, {pipeline_mode = #tpu.pipeline_mode<synchronous>, transform_indices = @transform_1, window_bounds = array<i64: 128, 128>}, {pipeline_mode = #tpu.pipeline_mode<synchronous>, transform_indices = @transform_2, window_bounds = array<i64: 24, 128>}, {pipeline_mode = #tpu.pipeline_mode<synchronous>, transform_indices = @transform_3, window_bounds = array<i64: 1, 128>}, {transform_indices = @transform_4, window_bounds = array<i64: 8, 128>}]} {
    %c0 = arith.constant 0 : index
    %c0_0 = arith.constant 0 : index
    %0 = vector.load %arg1[%c0, %c0_0] : memref<8x128xf32, #tpu.memory_space<vmem>>, vector<8x128xf32>
    %c0_1 = arith.constant 0 : index
    %c0_2 = arith.constant 0 : index
    %1 = vector.load %arg2[%c0_1, %c0_2] : memref<128x128xf32, #tpu.memory_space<vmem>>, vector<128x128xf32>
    %cst = arith.constant dense<0.000000e+00> : vector<8x128xf32>
    %2 = tpu.matmul %0, %1, %cst {dimension_numbers = #tpu.dot_dimension_numbers<[1], [0], [0], [1], [0, 0, 1, 1], [], []>} : vector<8x128xf32>, vector<128x128xf32>, vector<8x128xf32> -> vector<8x128xf32>
    %3 = vector.extract_strided_slice %2 {offsets = [0, 0], sizes = [8, 4], strides = [1, 1]} : vector<8x128xf32> to vector<8x4xf32>
    %4 = vector.extract_strided_slice %2 {offsets = [0, 24], sizes = [8, 4], strides = [1, 1]} : vector<8x128xf32> to vector<8x4xf32>
    %5 = vector.extract_strided_slice %2 {offsets = [0, 48], sizes = [8, 4], strides = [1, 1]} : vector<8x128xf32> to vector<8x4xf32>
    %cst_3 = arith.constant dense<0.000000e+00> : vector<8x8xf32>
    %6 = tpu.matmul %3, %4, %cst_3 {dimension_numbers = #tpu.dot_dimension_numbers<[1], [1], [0], [0], [0, 0, 1, 0], [], []>} : vector<8x4xf32>, vector<8x4xf32>, vector<8x8xf32> -> vector<8x8xf32>
    %cst_4 = arith.constant 5.000000e-01 : f32
    %7 = vector.broadcast %cst_4 : f32 to vector<8x8xf32>
    %8 = arith.mulf %6, %7 : vector<8x8xf32>
    %cst_5 = arith.constant dense<0xFF800000> : vector<8xf32>
    %9 = vector.multi_reduction <maximumf>, %8, %cst_5 [1] : vector<8x8xf32> to vector<8xf32>
    %10 = vector.shape_cast %9 : vector<8xf32> to vector<8x1xf32>
    %11 = vector.broadcast %10 : vector<8x1xf32> to vector<8x8xf32>
    %12 = arith.subf %8, %11 : vector<8x8xf32>
    %13 = math.exp %12 : vector<8x8xf32>
    %cst_6 = arith.constant dense<0.000000e+00> : vector<8xf32>
    %14 = vector.multi_reduction <add>, %13, %cst_6 [1] : vector<8x8xf32> to vector<8xf32>
    %15 = vector.shape_cast %14 : vector<8xf32> to vector<8x1xf32>
    %16 = vector.broadcast %15 : vector<8x1xf32> to vector<8x8xf32>
    %17 = arith.divf %13, %16 : vector<8x8xf32>
    %cst_7 = arith.constant dense<0.000000e+00> : vector<8x4xf32>
    %18 = tpu.matmul %17, %5, %cst_7 {dimension_numbers = #tpu.dot_dimension_numbers<[1], [0], [0], [1], [0, 0, 1, 1], [], []>} : vector<8x8xf32>, vector<8x4xf32>, vector<8x4xf32> -> vector<8x4xf32>
    %19 = vector.extract_strided_slice %2 {offsets = [0, 4], sizes = [8, 4], strides = [1, 1]} : vector<8x128xf32> to vector<8x4xf32>
    %20 = vector.extract_strided_slice %2 {offsets = [0, 28], sizes = [8, 4], strides = [1, 1]} : vector<8x128xf32> to vector<8x4xf32>
    %21 = vector.extract_strided_slice %2 {offsets = [0, 52], sizes = [8, 4], strides = [1, 1]} : vector<8x128xf32> to vector<8x4xf32>
    %cst_8 = arith.constant dense<0.000000e+00> : vector<8x8xf32>
    %22 = tpu.matmul %19, %20, %cst_8 {dimension_numbers = #tpu.dot_dimension_numbers<[1], [1], [0], [0], [0, 0, 1, 0], [], []>} : vector<8x4xf32>, vector<8x4xf32>, vector<8x8xf32> -> vector<8x8xf32>
    %cst_9 = arith.constant 5.000000e-01 : f32
    %23 = vector.broadcast %cst_9 : f32 to vector<8x8xf32>
    %24 = arith.mulf %22, %23 : vector<8x8xf32>
    %cst_10 = arith.constant dense<0xFF800000> : vector<8xf32>
    %25 = vector.multi_reduction <maximumf>, %24, %cst_10 [1] : vector<8x8xf32> to vector<8xf32>
    %26 = vector.shape_cast %25 : vector<8xf32> to vector<8x1xf32>
    %27 = vector.broadcast %26 : vector<8x1xf32> to vector<8x8xf32>
    %28 = arith.subf %24, %27 : vector<8x8xf32>
    %29 = math.exp %28 : vector<8x8xf32>
    %cst_11 = arith.constant dense<0.000000e+00> : vector<8xf32>
    %30 = vector.multi_reduction <add>, %29, %cst_11 [1] : vector<8x8xf32> to vector<8xf32>
    %31 = vector.shape_cast %30 : vector<8xf32> to vector<8x1xf32>
    %32 = vector.broadcast %31 : vector<8x1xf32> to vector<8x8xf32>
    %33 = arith.divf %29, %32 : vector<8x8xf32>
    %cst_12 = arith.constant dense<0.000000e+00> : vector<8x4xf32>
    %34 = tpu.matmul %33, %21, %cst_12 {dimension_numbers = #tpu.dot_dimension_numbers<[1], [0], [0], [1], [0, 0, 1, 1], [], []>} : vector<8x8xf32>, vector<8x4xf32>, vector<8x4xf32> -> vector<8x4xf32>
    %35 = vector.extract_strided_slice %2 {offsets = [0, 8], sizes = [8, 4], strides = [1, 1]} : vector<8x128xf32> to vector<8x4xf32>
    %36 = vector.extract_strided_slice %2 {offsets = [0, 32], sizes = [8, 4], strides = [1, 1]} : vector<8x128xf32> to vector<8x4xf32>
    %37 = vector.extract_strided_slice %2 {offsets = [0, 56], sizes = [8, 4], strides = [1, 1]} : vector<8x128xf32> to vector<8x4xf32>
    %cst_13 = arith.constant dense<0.000000e+00> : vector<8x8xf32>
    %38 = tpu.matmul %35, %36, %cst_13 {dimension_numbers = #tpu.dot_dimension_numbers<[1], [1], [0], [0], [0, 0, 1, 0], [], []>} : vector<8x4xf32>, vector<8x4xf32>, vector<8x8xf32> -> vector<8x8xf32>
    %cst_14 = arith.constant 5.000000e-01 : f32
    %39 = vector.broadcast %cst_14 : f32 to vector<8x8xf32>
    %40 = arith.mulf %38, %39 : vector<8x8xf32>
    %cst_15 = arith.constant dense<0xFF800000> : vector<8xf32>
    %41 = vector.multi_reduction <maximumf>, %40, %cst_15 [1] : vector<8x8xf32> to vector<8xf32>
    %42 = vector.shape_cast %41 : vector<8xf32> to vector<8x1xf32>
    %43 = vector.broadcast %42 : vector<8x1xf32> to vector<8x8xf32>
    %44 = arith.subf %40, %43 : vector<8x8xf32>
    %45 = math.exp %44 : vector<8x8xf32>
    %cst_16 = arith.constant dense<0.000000e+00> : vector<8xf32>
    %46 = vector.multi_reduction <add>, %45, %cst_16 [1] : vector<8x8xf32> to vector<8xf32>
    %47 = vector.shape_cast %46 : vector<8xf32> to vector<8x1xf32>
    %48 = vector.broadcast %47 : vector<8x1xf32> to vector<8x8xf32>
    %49 = arith.divf %45, %48 : vector<8x8xf32>
    %cst_17 = arith.constant dense<0.000000e+00> : vector<8x4xf32>
    %50 = tpu.matmul %49, %37, %cst_17 {dimension_numbers = #tpu.dot_dimension_numbers<[1], [0], [0], [1], [0, 0, 1, 1], [], []>} : vector<8x8xf32>, vector<8x4xf32>, vector<8x4xf32> -> vector<8x4xf32>
    %51 = vector.extract_strided_slice %2 {offsets = [0, 12], sizes = [8, 4], strides = [1, 1]} : vector<8x128xf32> to vector<8x4xf32>
    %52 = vector.extract_strided_slice %2 {offsets = [0, 36], sizes = [8, 4], strides = [1, 1]} : vector<8x128xf32> to vector<8x4xf32>
    %53 = vector.extract_strided_slice %2 {offsets = [0, 60], sizes = [8, 4], strides = [1, 1]} : vector<8x128xf32> to vector<8x4xf32>
    %cst_18 = arith.constant dense<0.000000e+00> : vector<8x8xf32>
    %54 = tpu.matmul %51, %52, %cst_18 {dimension_numbers = #tpu.dot_dimension_numbers<[1], [1], [0], [0], [0, 0, 1, 0], [], []>} : vector<8x4xf32>, vector<8x4xf32>, vector<8x8xf32> -> vector<8x8xf32>
    %cst_19 = arith.constant 5.000000e-01 : f32
    %55 = vector.broadcast %cst_19 : f32 to vector<8x8xf32>
    %56 = arith.mulf %54, %55 : vector<8x8xf32>
    %cst_20 = arith.constant dense<0xFF800000> : vector<8xf32>
    %57 = vector.multi_reduction <maximumf>, %56, %cst_20 [1] : vector<8x8xf32> to vector<8xf32>
    %58 = vector.shape_cast %57 : vector<8xf32> to vector<8x1xf32>
    %59 = vector.broadcast %58 : vector<8x1xf32> to vector<8x8xf32>
    %60 = arith.subf %56, %59 : vector<8x8xf32>
    %61 = math.exp %60 : vector<8x8xf32>
    %cst_21 = arith.constant dense<0.000000e+00> : vector<8xf32>
    %62 = vector.multi_reduction <add>, %61, %cst_21 [1] : vector<8x8xf32> to vector<8xf32>
    %63 = vector.shape_cast %62 : vector<8xf32> to vector<8x1xf32>
    %64 = vector.broadcast %63 : vector<8x1xf32> to vector<8x8xf32>
    %65 = arith.divf %61, %64 : vector<8x8xf32>
    %cst_22 = arith.constant dense<0.000000e+00> : vector<8x4xf32>
    %66 = tpu.matmul %65, %53, %cst_22 {dimension_numbers = #tpu.dot_dimension_numbers<[1], [0], [0], [1], [0, 0, 1, 1], [], []>} : vector<8x8xf32>, vector<8x4xf32>, vector<8x4xf32> -> vector<8x4xf32>
    %67 = vector.extract_strided_slice %2 {offsets = [0, 16], sizes = [8, 4], strides = [1, 1]} : vector<8x128xf32> to vector<8x4xf32>
    %68 = vector.extract_strided_slice %2 {offsets = [0, 40], sizes = [8, 4], strides = [1, 1]} : vector<8x128xf32> to vector<8x4xf32>
    %69 = vector.extract_strided_slice %2 {offsets = [0, 64], sizes = [8, 4], strides = [1, 1]} : vector<8x128xf32> to vector<8x4xf32>
    %cst_23 = arith.constant dense<0.000000e+00> : vector<8x8xf32>
    %70 = tpu.matmul %67, %68, %cst_23 {dimension_numbers = #tpu.dot_dimension_numbers<[1], [1], [0], [0], [0, 0, 1, 0], [], []>} : vector<8x4xf32>, vector<8x4xf32>, vector<8x8xf32> -> vector<8x8xf32>
    %cst_24 = arith.constant 5.000000e-01 : f32
    %71 = vector.broadcast %cst_24 : f32 to vector<8x8xf32>
    %72 = arith.mulf %70, %71 : vector<8x8xf32>
    %cst_25 = arith.constant dense<0xFF800000> : vector<8xf32>
    %73 = vector.multi_reduction <maximumf>, %72, %cst_25 [1] : vector<8x8xf32> to vector<8xf32>
    %74 = vector.shape_cast %73 : vector<8xf32> to vector<8x1xf32>
    %75 = vector.broadcast %74 : vector<8x1xf32> to vector<8x8xf32>
    %76 = arith.subf %72, %75 : vector<8x8xf32>
    %77 = math.exp %76 : vector<8x8xf32>
    %cst_26 = arith.constant dense<0.000000e+00> : vector<8xf32>
    %78 = vector.multi_reduction <add>, %77, %cst_26 [1] : vector<8x8xf32> to vector<8xf32>
    %79 = vector.shape_cast %78 : vector<8xf32> to vector<8x1xf32>
    %80 = vector.broadcast %79 : vector<8x1xf32> to vector<8x8xf32>
    %81 = arith.divf %77, %80 : vector<8x8xf32>
    %cst_27 = arith.constant dense<0.000000e+00> : vector<8x4xf32>
    %82 = tpu.matmul %81, %69, %cst_27 {dimension_numbers = #tpu.dot_dimension_numbers<[1], [0], [0], [1], [0, 0, 1, 1], [], []>} : vector<8x8xf32>, vector<8x4xf32>, vector<8x4xf32> -> vector<8x4xf32>
    %83 = vector.extract_strided_slice %2 {offsets = [0, 20], sizes = [8, 4], strides = [1, 1]} : vector<8x128xf32> to vector<8x4xf32>
    %84 = vector.extract_strided_slice %2 {offsets = [0, 44], sizes = [8, 4], strides = [1, 1]} : vector<8x128xf32> to vector<8x4xf32>
    %85 = vector.extract_strided_slice %2 {offsets = [0, 68], sizes = [8, 4], strides = [1, 1]} : vector<8x128xf32> to vector<8x4xf32>
    %cst_28 = arith.constant dense<0.000000e+00> : vector<8x8xf32>
    %86 = tpu.matmul %83, %84, %cst_28 {dimension_numbers = #tpu.dot_dimension_numbers<[1], [1], [0], [0], [0, 0, 1, 0], [], []>} : vector<8x4xf32>, vector<8x4xf32>, vector<8x8xf32> -> vector<8x8xf32>
    %cst_29 = arith.constant 5.000000e-01 : f32
    %87 = vector.broadcast %cst_29 : f32 to vector<8x8xf32>
    %88 = arith.mulf %86, %87 : vector<8x8xf32>
    %cst_30 = arith.constant dense<0xFF800000> : vector<8xf32>
    %89 = vector.multi_reduction <maximumf>, %88, %cst_30 [1] : vector<8x8xf32> to vector<8xf32>
    %90 = vector.shape_cast %89 : vector<8xf32> to vector<8x1xf32>
    %91 = vector.broadcast %90 : vector<8x1xf32> to vector<8x8xf32>
    %92 = arith.subf %88, %91 : vector<8x8xf32>
    %93 = math.exp %92 : vector<8x8xf32>
    %cst_31 = arith.constant dense<0.000000e+00> : vector<8xf32>
    %94 = vector.multi_reduction <add>, %93, %cst_31 [1] : vector<8x8xf32> to vector<8xf32>
    %95 = vector.shape_cast %94 : vector<8xf32> to vector<8x1xf32>
    %96 = vector.broadcast %95 : vector<8x1xf32> to vector<8x8xf32>
    %97 = arith.divf %93, %96 : vector<8x8xf32>
    %cst_32 = arith.constant dense<0.000000e+00> : vector<8x4xf32>
    %98 = tpu.matmul %97, %85, %cst_32 {dimension_numbers = #tpu.dot_dimension_numbers<[1], [0], [0], [1], [0, 0, 1, 1], [], []>} : vector<8x8xf32>, vector<8x4xf32>, vector<8x4xf32> -> vector<8x4xf32>
    %99 = tpu.concatenate %18, %34, %50, %66, %82, %98 in 1 : vector<8x4xf32>, vector<8x4xf32>, vector<8x4xf32>, vector<8x4xf32>, vector<8x4xf32>, vector<8x4xf32> -> vector<8x24xf32>
    %c0_33 = arith.constant 0 : index
    %c0_34 = arith.constant 0 : index
    %100 = vector.load %arg3[%c0_33, %c0_34] : memref<24x128xf32, #tpu.memory_space<vmem>>, vector<24x128xf32>
    %cst_35 = arith.constant dense<0.000000e+00> : vector<8x128xf32>
    %101 = tpu.matmul %99, %100, %cst_35 {dimension_numbers = #tpu.dot_dimension_numbers<[1], [0], [0], [1], [0, 0, 1, 1], [], []>} : vector<8x24xf32>, vector<24x128xf32>, vector<8x128xf32> -> vector<8x128xf32>
    %c0_36 = arith.constant 0 : index
    %c0_37 = arith.constant 0 : index
    %102 = vector.load %arg4[%c0_36, %c0_37] : memref<1x128xf32, #tpu.memory_space<vmem>>, vector<1x128xf32>
    %103 = vector.broadcast %102 : vector<1x128xf32> to vector<8x128xf32>
    %104 = arith.addf %101, %103 : vector<8x128xf32>
    %c0_38 = arith.constant 0 : index
    %c0_39 = arith.constant 0 : index
    %105 = vector.load %arg5[%c0_38, %c0_39] : memref<8x128xf32, #tpu.memory_space<vmem>>, vector<8x128xf32>
    tpu.vector_store %arg5[%c0_38, %c0_39], %104 {strides = array<i32>} : memref<8x128xf32, #tpu.memory_space<vmem>>, vector<8x128xf32>,
    return
  }
  func.func @transform_0(%arg0: i32) -> (i32, i32) {
    %c0_i32 = arith.constant 0 : i32
    %c0_i32_0 = arith.constant 0 : i32
    return %arg0, %c0_i32 : i32, i32
  }
  func.func @transform_1(%arg0: i32) -> (i32, i32) {
    %c0_i32 = arith.constant 0 : i32
    %c0_i32_0 = arith.constant 0 : i32
    %c0_i32_1 = arith.constant 0 : i32
    return %c0_i32, %c0_i32_0 : i32, i32
  }
  func.func @transform_2(%arg0: i32) -> (i32, i32) {
    %c0_i32 = arith.constant 0 : i32
    %c0_i32_0 = arith.constant 0 : i32
    %c0_i32_1 = arith.constant 0 : i32
    return %c0_i32, %c0_i32_0 : i32, i32
  }
  func.func @transform_3(%arg0: i32) -> (i32, i32) {
    %c0_i32 = arith.constant 0 : i32
    %c0_i32_0 = arith.constant 0 : i32
    %c0_i32_1 = arith.constant 0 : i32
    return %c0_i32, %c0_i32_0 : i32, i32
  }
  func.func @transform_4(%arg0: i32) -> (i32, i32) {
    %c0_i32 = arith.constant 0 : i32
    %c0_i32_0 = arith.constant 0 : i32
    return %arg0, %c0_i32 : i32, i32
  }
}

</mosaic_0001>

<bundles_post_ra>
// kernel: tpu_custom_call.1
= control target key start
LH: loop header
LB: loop body
LE: loop exit
PB: predicated region body
PF: predicated region fallthrough
CT: control target
= control target key end

     0   :  { %9 = vsyncpa [#allocation3], 0  ;;  %s2433_s0 = inlined_call_operand.hbm [shape: f32[16,128], index: 0, kind: input, shape index: {}]   ;;  %s2434_s1 = inlined_call_operand.hbm [shape: f32[128,128], index: 1, kind: input, shape index: {}]   ;;  %s2435_s2 = inlined_call_operand.hbm [shape: f32[24,128], index: 2, kind: input, shape index: {}]   ;;  %s2436_s3 = inlined_call_operand.vmem [shape: f32[1,128], index: 3, kind: input, shape index: {}]   ;;  %s2437_s4 = inlined_call_operand.hbm [shape: f32[16,128], index: 4, kind: output, shape index: {}]  }
   0x1   :  { %11 = vsyncpa [#allocation3 + $0x1], 0 }
   0x2   :  { %12 = vsyncpa [#allocation6], 0 }
   0x3   :  { %13 = vsyncpa [#allocation4], 0 }
   0x4   :  { %15 = vsyncpa [#allocation4 + $0x1], 0  ;;  %s2086_s15 = smov 0   ;;  %s2088_s16 = smov 0  }
   0x5   :  { %s2090_s17 = smov 0   ;;  %s2092_s18 = smov 0  }
   0x6 LB: > { %s2107_s19 = sadd.s32 4294967295, %s2028_s18   ;;  %s1542_s20 = sadd.s32 4294967294, %s2028_s18   ;;  %s2028_s18 = sphi %s2092_s18, %s2457_s18   ;;  %s2024_s17 = sphi %s2090_s17, %s2456_s17   ;;  %s2020_s16 = sphi %s2088_s16, %s2455_s16   ;;  %s2016_s15 = sphi %s2086_s15, %s2454_s15  }
   0x7   : > { %p41_p0 = scmp.ne.s32.totalorder %s2020_s16, %s2016_s15  ;;  %p2438_p1 = scmp.eq.s32.totalorder %s2107_s19, 0 }
   0x8   : > { %p134_p3 = scmp.eq.s32.totalorder %s1542_s20, 1  ;;  %p1543_p5 = scmp.ge.s32.totalorder %s2028_s18, 1 }
   0x9   : > { %p2116_p4 = por %p2438_p1, %p41_p0  ;;  %p141_p7 = scmp.lt.s32.totalorder %s2028_s18, 3 }
   0xa   : > { %p2121_p6 = por %p134_p3, %p41_p0  ;;  %s2030_s24 = smov [#allocation5]  }
   0xb   : > { %s2441_s21 = scalar_select %p2116_p4, 1, 0 }
   0xc   : > { %s2442_s22 = scalar_select %p2121_p6, 1, 0 }
   0xd   : > { %p2126_p8 = pnand %p1543_p5, %p141_p7  ;;  %s153_s25 = sshll.u32 %s2030_s24, 4  ;;  %s2130_s25 = int_to_ptr.vmem [resolvable:$true] %s153_s25 }
   0xe   : > { %s2031_s27 = smov [#allocation7]   ;;  %s1872_s5 = scalar_lea.hbm %s2434_s1, 2048 }
   0xf   : > { %p1766_p9 = pneg %p2126_p8  ;;  %s166_s28 = sshll.u32 %s2031_s27, 4  ;;  %s2141_s28 = int_to_ptr.vmem [resolvable:$true] %s166_s28 }
  0x10   : > { %p1873_p12 = scmp.ne.s32.totalorder %s2434_s1, %s1872_s5  ;;  %p1879_p5 = scmp.lt.u32.totalorder %s1872_s5, %s2434_s1 }
  0x11   : > { %p2137_p11 = pnand %p1766_p9, %p2438_p1 }
  0x13   : > { %p1874_p13 = pneg %p2137_p11 }
  0x15   : > { %p1875_p0 = pnand %p1874_p13, %p1873_p12 }
  0x17   : > { %p1876_p3 = pneg %p1875_p0 }
  0x19   : > { %p1881_p7 = pnand %p1879_p5, %p1876_p3 }
  0x1b   : > { %1884 = shalt.err (!%p1881_p7)
}
  0x1c   : > { %s1885_s10 = scalar_lea.vmem %s2130_s25, 2048  ;;  %p1893_p2 = scmp.lt.s32.totalorder %s2130_s25, %s2130_s25 }
  0x1d   : > { %p1886_p9 = scmp.ne.s32.totalorder %s2130_s25, %s1885_s10  ;;  %p1894_p12 = scmp.lt.s32.totalorder %s1885_s10, %s1885_s10 }
  0x1f   : > { %p1888_p10 = pnand %p1886_p9, %p1874_p13  ;;  %p1895_p0 = por %p1894_p12, %p1893_p2 }
  0x21   : > { %p1889_p1 = pneg %p1888_p10 }
  0x23   : > { %p1896_p6 = pnand %p1895_p0, %p1889_p1 }
  0x25   : > { %1899 = shalt.err (!%p1896_p6)
}
  0x26   : > { %s2032_s11 = smov 128   ;;  %s2033_s12 = smov 8  }
  0x27   : > { %1769 = dma.hbm_to_vmem [thread:$0]  (!%p2137_p11), %s2434_s1, 2048, %s2130_s25, [#allocation6], %s2032_s11, %s2032_s11, %s2033_s12  }
  0x28   : > { %s1900_s27 = scalar_lea.hbm %s2435_s2, 384 }
  0x29   : > { %p1901_p2 = scmp.ne.s32.totalorder %s2435_s2, %s1900_s27  ;;  %p1907_p10 = scmp.lt.u32.totalorder %s1900_s27, %s2435_s2 }
  0x2b   : > { %p1903_p1 = pnand %p1901_p2, %p1874_p13 }
  0x2d   : > { %p1904_p6 = pneg %p1903_p1 }
  0x2f   : > { %p1909_p3 = pnand %p1907_p10, %p1904_p6 }
  0x31   : > { %1912 = shalt.err (!%p1909_p3)
}
  0x32   : > { %s1913_s25 = scalar_lea.vmem %s2141_s28, 384  ;;  %p1921_p12 = scmp.lt.s32.totalorder %s2141_s28, %s2141_s28 }
  0x33   : > { %p1914_p5 = scmp.ne.s32.totalorder %s2141_s28, %s1913_s25  ;;  %p1922_p0 = scmp.lt.s32.totalorder %s1913_s25, %s1913_s25 }
  0x35   : > { %p1916_p7 = pnand %p1914_p5, %p1874_p13  ;;  %p1923_p2 = por %p1922_p0, %p1921_p12 }
  0x37   : > { %p1917_p9 = pneg %p1916_p7 }
  0x39   : > { %p1924_p1 = pnand %p1923_p2, %p1917_p9 }
  0x3b   : > { %1927 = shalt.err (!%p1924_p1)
}
  0x3c   : > { %1772 = dma.hbm_to_vmem [thread:$0]  (!%p2137_p11), %s2435_s2, 384, %s2141_s28, [#allocation6], %s2032_s11, %s2032_s11, %s2033_s12  }
  0x3d   : > { %s2196_s9 = sadd.s32 1, %s2028_s18   ;;  %s28_s26 = sadd.s32 1, %s2024_s17 }
  0x3e   : > { %s25_s10 = ssub.s32 %s2028_s18, %s2196_s9  ;;  %p35_p13 = scmp.ne.s32.totalorder %s2024_s17, %s2020_s16 }
  0x3f   : > { %p26_p6 = scmp.eq.s32.totalorder %s25_s10, 0  ;;  %p36_p10 = scmp.eq.s32.totalorder %s2028_s18, 0 }
  0x40   : > { %p2445_p3 = scmp.eq.s32.totalorder %s2107_s19, 1  ;;  %p1783_p7 = scmp.lt.s32.totalorder %s2028_s18, 2 }
  0x41   : > { %s2212_s14 = scalar_select %p26_p6, %s2024_s17, %s28_s26  }
  0x42   : > { %p2206_p5 = por %p2445_p3, %p35_p13  ;;  %p37_p9 = por %p36_p10, %p35_p13 }
  0x43   : > { %s183_s20 = sand.u32 1, %s2024_s17   ;;  %s1548_s28 = sshll.u32 %s2028_s18, 7 }
  0x44   : > { %s2446_s13 = scalar_select %p2206_p5, 1, 0 }
  0x45   : > { %s1547_s24 = sshll.u32 %s183_s20, 3  ;;  %s2219_s27 = scalar_lea.hbm %s2433_s0, %s1548_s28 }
  0x46   : > { %s187_s29 = scalar_lea.vmem [#allocation2], %s1547_s24  ;;  %p2223_p11 = pnand %p1783_p7, %p37_p9 }
  0x47   : > { %s194_s30 = sshll.u32 %s187_s29, 4  ;;  %s184_s6 = scalar_lea.sflag [#allocation3], %s183_s20  ;;  %s2221_s30 = int_to_ptr.vmem [resolvable:$true] %s194_s30 }
  0x48   : > { %s1928_s25 = scalar_lea.hbm %s2219_s27, 128  ;;  %p1930_p0 = pneg %p2223_p11 }
  0x49   : > { %p1929_p12 = scmp.ne.s32.totalorder %s2219_s27, %s1928_s25  ;;  %s1933_s26 = scalar_lea.hbm %s2433_s0, 256 }
  0x4a   : > { %p1934_p13 = scmp.lt.u32.totalorder %s2219_s27, %s2433_s0  ;;  %p1935_p6 = scmp.lt.u32.totalorder %s1933_s26, %s1928_s25 }
  0x4b   : > { %p1931_p2 = pnand %p1930_p0, %p1929_p12  ;;  %p1937_p3 = scmp.lt.u32.totalorder %s1928_s25, %s2219_s27 }
  0x4c   : > { %p1936_p10 = por %p1935_p6, %p1934_p13 }
  0x4d   : > { %p1932_p1 = pneg %p1931_p2 }
  0x4e   : > { %p1938_p7 = por %p1937_p3, %p1936_p10 }
  0x50   : > { %p1939_p9 = pnand %p1938_p7, %p1932_p1 }
  0x52   : > { %1942 = shalt.err (!%p1939_p9)
}
  0x53   : > { %s1943_s20 = scalar_lea.vmem %s2221_s30, 128  ;;  %s2034_s28 = smov [#allocation2]  }
  0x54   : > { %p1944_p12 = scmp.ne.s32.totalorder %s2221_s30, %s1943_s20  ;;  %s1948_s11 = sshll.u32 %s2034_s28, 4  ;;  %s1949_s11 = int_to_ptr.vmem [resolvable:$false] %s1948_s11 }
  0x55   : > { %s1950_s12 = scalar_lea.vmem %s1949_s11, 256  ;;  %p1951_p4 = scmp.lt.s32.totalorder %s2221_s30, %s1949_s11 }
  0x56   : > { %p1946_p2 = pnand %p1944_p12, %p1930_p0  ;;  %p1952_p13 = scmp.lt.s32.totalorder %s1950_s12, %s1943_s20 }
  0x58   : > { %p1947_p5 = pneg %p1946_p2  ;;  %p1953_p6 = por %p1952_p13, %p1951_p4 }
  0x5a   : > { %p1954_p10 = pnand %p1953_p6, %p1947_p5 }
  0x5c   : > { %1957 = shalt.err (!%p1954_p10)
}
  0x5d   : > { %1776 = dma.hbm_to_vmem [thread:$0]  (!%p2223_p11), %s2219_s27, 128, %s2221_s30, %s184_s6  }
  0x5e   : > { %203 = sbr.rel (%p2126_p8) target bundleno = 3685 (0xe65), region = 36  ;;  %s2255_s29 = sand.u32 (!%p2126_p8), 1, %s2020_s16  }
  0x5f   : > { %s1550_s25 = sshll.u32 (!%p2126_p8), %s2255_s29, 3  ;;  %s206_s7 = scalar_lea.sflag (!%p2126_p8), [#allocation3], %s2255_s29 }
  0x60   : > { %s2261_s8 = scalar_lea.vmem (!%p2126_p8), [#allocation2], %s1550_s25  ;;  %p2448_p4 = scmp.ne.s32.totalorder (!%p2126_p8), %s2441_s21, 0 }
  0x65   : > { %2003 = dma.done.wait (%p2448_p4), %s206_s7, 128  }
  0x66   : > { %2005 = vsyncadd (%p2448_p4), %s206_s7, 4294967168  ;;  %p2449_p5 = scmp.eq.s32.totalorder %s2107_s19, 0 }
  0x68   : > { %2007 = dma.done.wait (%p2449_p5), [#allocation6], 2432   ;;  %p2450_p8 = pmov %p2449_p5 }
  0x69   : > { %v2035_v0 = vmov 0.0|0.0   ;;  %vm2036_vm0 = vmmov 0   ;;  %v2037_v1 = vmov 0.0   ;;  %v243_v2 = vld [vmem:[#allocation5] sm:$0xff]  ;;  %v244_v3 = vld [vmem:[#allocation5 + $0x8] sm:$0xff]  ;;  %v245_v4 = vld [vmem:[#allocation5 + $0x10] sm:$0xff] }
  0x6a   : > { %2009 = vsyncadd (%p2450_p8), [#allocation6], 4294964864  ;;  %1727 = vmatprep.subr.bf16.mxu0 %v2035_v0  ;;  %1655 = vmatprep.mubr.msk.f32.mxu0 %vm2036_vm0, %v2037_v1  ;;  %v1728_v5 = vpack.c.bf16 %v244_v3, %v243_v2  ;;  %v246_v6 = vld [vmem:[#allocation5 + $0x18] sm:$0xff]  ;;  %v247_v8 = vld [vmem:[#allocation5 + $0x20] sm:$0xff]  ;;  %s2038_s21 = smov 80   ;;  %s2039_s23 = smov 104  }
  0x6b   : > { %1658 = vmatprep.subr.mxu1 %v2037_v1  ;;  %1660 = vmatprep.mubr.msk.f32.mxu1 %vm2036_vm0, %v2037_v1  ;;  %v1731_v7 = vpack.c.bf16 %v246_v6, %v245_v4  ;;  %v248_v9 = vld [vmem:[#allocation5 + $0x28] sm:$0xff]  ;;  %v249_v11 = vld [vmem:[#allocation5 + $0x30] sm:$0xff]  ;;  %v250_v12 = vld [vmem:[#allocation5 + $0x38] sm:$0xff]  ;;  %s2040_s27 = smov 100   ;;  %vm332_vm1 = vcmask 31744   ;;  %vm408_vm2 = vcmask 64512  }
  0x6c   : > { %1729 = vmatpush3.bf16.msra.mxu0 %v1728_v5  ;;  %v1734_v10 = vpack.c.bf16 %v248_v9, %v247_v8  ;;  %v1737_v13 = vpack.c.bf16 %v250_v12, %v249_v11  ;;  %v251_v14 = vld [vmem:[#allocation5 + $0x40] sm:$0xff]  ;;  %v252_v15 = vld [vmem:[#allocation5 + $0x48] sm:$0xff]  ;;  %v253_v17 = vld [vmem:[#allocation5 + $0x50] sm:$0xff]  ;;  %s2041_s30 = smov 76   ;;  %s2042_s5 = smov 96   ;;  %vm1348_vm3 = vcmask 97280  }
  0x6d   : > { %1730 = vmatprep.subr.bf16.mxu0 %v2035_v0  ;;  %v1740_v16 = vpack.c.bf16 %v252_v15, %v251_v14  ;;  %v254_v18 = vld [vmem:[#allocation5 + $0x58] sm:$0xff]  ;;  %v255_v20 = vld [vmem:[#allocation5 + $0x60] sm:$0xff]  ;;  %v256_v21 = vld [vmem:[#allocation5 + $0x68] sm:$0xff]  ;;  %s2043_s6 = smov 124   ;;  %s2044_s26 = smov 120   ;;  %vm1350_vm4 = vcmask 130048  }
  0x6e   : > { %v1743_v19 = vpack.c.bf16 %v254_v18, %v253_v17  ;;  %v1746_v22 = vpack.c.bf16 %v256_v21, %v255_v20  ;;  %v257_v23 = vld [vmem:[#allocation5 + $0x70] sm:$0xff]  ;;  %v258_v24 = vld [vmem:[#allocation5 + $0x78] sm:$0xff]  ;;  %s2045_s10 = smov 72   ;;  %s2046_s24 = smov 92   ;;  %vm1352_vm5 = vcmask 162816   ;;  %vm1364_vm6 = vcmask 195584  }
  0x6f   : > { %v1749_v25 = vpack.c.bf16 %v258_v24, %v257_v23  ;;  %v242_v26 = vld [vmem:[%s2261_s8] sm:$0xff]  ;;  %s2047_s20 = smov 116   ;;  %s2048_s28 = smov 68  }
  0x70   : > { %1732 = vmatpush3.bf16.msra.mxu0 %v1731_v7  ;;  %s2049_s11 = smov 88   ;;  %s2050_s12 = smov 84  }
  0x71   : > { %1733 = vmatprep.subr.bf16.mxu0 %v2035_v0  ;;  %s2051_s7 = smov 112   ;;  %s2052_s8 = smov 108  }
  0x72   : > { %p2451_p0 = scmp.ne.s32.totalorder %s2446_s13, 0 }
  0x74   : > { %1735 = vmatpush3.bf16.msra.mxu0 %v1734_v10 }
  0x75   : > { %1736 = vmatprep.subr.bf16.mxu0 %v2035_v0 }
  0x78   : > { %1738 = vmatpush3.bf16.msra.mxu0 %v1737_v13 }
  0x79   : > { %1739 = vmatprep.subr.bf16.mxu0 %v2035_v0 }
  0x7c   : > { %1741 = vmatpush3.bf16.msra.mxu0 %v1740_v16 }
  0x7d   : > { %1742 = vmatprep.subr.bf16.mxu0 %v2035_v0 }
  0x80   : > { %1744 = vmatpush3.bf16.msra.mxu0 %v1743_v19 }
  0x81   : > { %1745 = vmatprep.subr.bf16.mxu0 %v2035_v0 }
  0x84   : > { %1747 = vmatpush3.bf16.msra.mxu0 %v1746_v22 }
  0x85   : > { %1748 = vmatprep.subr.bf16.mxu0 %v2035_v0 }
  0x88   : > { %1750 = vmatpush3.bf16.msra.mxu0 %v1749_v25 }
  0x89   : > { %1708 = vmatprep.subr.mxu0 %v2037_v1 }
  0x8b   : > { %1656 = vmatmul.mubr.f32.vlgmr.msra.gmra.mrb[0].mxu0 %v242_v26 }
  0x8c   : > { %1710 = vmatprep.mubr.msk.f32.mxu0 %vm2036_vm0, %v2037_v1 }
 0x15e   : > { %v2288_v27 = vpop.f32.mrb[0].mxu0 }
 0x15f   : > { %420 = vrot.lane.b32.xlu1 %v2288_v27, %s2038_s21  ;;  %330 = vrot.lane.b32.xlu0 %v2288_v27, %s2039_s23  ;;  %v1657_v28 = vpop.f32.mrb[1].mxu0  ;;  %s2053_s21 = smov 60   ;;  %s2054_s23 = smov 8  }
 0x163   : > { %498 = vrot.lane.b32.xlu1 %v2288_v27, %s2040_s27  ;;  %s2055_s27 = smov 64  }
 0x1d1   : > { %v331_v29 = vpop.permute.xlu0 %330  ;;  %v421_v30 = vpop.permute.xlu1 %420 }
 0x1d2   : > { %1659 = vmatpush3.xpose.msk.msra.mxu1 %vm332_vm1, %v331_v29 }
 0x1d3   : > { %1663 = vmatprep.subr.mxu1 %v2037_v1 }
 0x1d5   : > { %1661 = vmatmul.mubr.msk.f32.vlgmr.msra.gmra.mrb[0].mxu1 %vm332_vm1, %v2288_v27  ;;  %v499_v40 = vpop.permute.xlu1 %498 }
 0x1d6   : > { %1664 = vmatpush3.msra.mxu1 %v421_v30  ;;  %1665 = vmatprep.mubr.msk.f32.mxu1 %vm2036_vm0, %v2037_v1 }
 0x1d7   : > { %1668 = vmatprep.subr.mxu1 %v2037_v1 }
 0x2a8   : > { %v403_v31 = vpop.f32.mrb[0].mxu1 }
 0x2a9   : > { %v407_v32 = vmul.f32 0.5, %v403_v31  ;;  %v1662_v33 = vpop.f32.mrb[1].mxu1 }
 0x2ab   : > { %v409_v34 = vsel %vm408_vm2, %v407_v32, -inf }
 0x2ac   : > { %410 = vmax.xlane.f32.xlu0 %v409_v34 }
 0x2c2   : > { %586 = vrot.lane.b32.xlu0 %v2288_v27, %s2041_s30  ;;  %s2056_s30 = smov 4  }
 0x2c6   : > { %664 = vrot.lane.b32.xlu0 %v2288_v27, %s2042_s5  ;;  %s2057_s5 = smov 12  }
 0x339   : > { %v411_v35 = vpop.xlane.xlu0 %410 }
 0x33a   : > { %v412_v36 = vsub.f32 %v407_v32, %v411_v35 }
 0x33c   : > { %v413_v37 = vmul.f32 1.442695, %v412_v36 }
 0x33d   : > { %v587_v45 = vpop.permute.xlu0 %586 }
 0x33e   : > { %1848 = vpow2.f32 %v413_v37 }
 0x341   : > { %v665_v57 = vpop.permute.xlu0 %664 }
 0x348   : > { %v1849_v38 = vpop.eup %1848 }
 0x349   : > { %v415_v39 = vsel %vm408_vm2, %v1849_v38, 0.0 }
 0x34a   : > { %416 = vadd.xlane.f32.xlu1 %v415_v39 }
 0x35b   : > { %496 = vrot.lane.b32.xlu1 %v2288_v27, %s2043_s6  ;;  %s2058_s6 = smov 16  }
 0x3d7   : > { %v417_v41 = vpop.xlane.xlu1 %416 }
 0x3d8   : > { %1850 = vrcp.f32 %v417_v41 }
 0x3db   : > { %v497_v44 = vpop.permute.xlu1 %496 }
 0x3e2   : > { %v1851_v42 = vpop.eup %1850 }
 0x3e3   : > { %v419_v43 = vmul.f32 %v1851_v42, %v1849_v38 }
 0x3e5   : > { %1666 = vmatmul.mubr.msk.f32.vlgmr.msra.gmra.mrb[2].mxu1 %vm408_vm2, %v419_v43 }
 0x3e6   : > { %1669 = vmatpush3.xpose.msk.msra.mxu1 %vm332_vm1, %v499_v40  ;;  %1670 = vmatprep.mubr.msk.f32.mxu1 %vm2036_vm0, %v2037_v1 }
 0x3e7   : > { %1673 = vmatprep.subr.mxu1 %v2037_v1 }
 0x3e9   : > { %1671 = vmatmul.mubr.msk.f32.vlgmr.msra.gmra.mrb[4].mxu1 %vm332_vm1, %v497_v44 }
 0x3ea   : > { %1674 = vmatpush3.msra.mxu1 %v587_v45  ;;  %1675 = vmatprep.mubr.msk.f32.mxu1 %vm2036_vm0, %v2037_v1 }
 0x3eb   : > { %1678 = vmatprep.subr.mxu1 %v2037_v1 }
 0x4b8   : > { %v2314_v46 = vpop.f32.mrb[2].mxu1 }
 0x4b9   : > { %v1667_v47 = vpop.f32.mrb[3].mxu1 }
 0x4bc   : > { %v570_v48 = vpop.f32.mrb[4].mxu1 }
 0x4bd   : > { %v574_v49 = vmul.f32 0.5, %v570_v48  ;;  %v1672_v50 = vpop.f32.mrb[5].mxu1 }
 0x4bf   : > { %v575_v51 = vsel %vm408_vm2, %v574_v49, -inf }
 0x4c0   : > { %576 = vmax.xlane.f32.xlu1 %v575_v51 }
 0x54d   : > { %v577_v52 = vpop.xlane.xlu1 %576 }
 0x54e   : > { %v578_v53 = vsub.f32 %v574_v49, %v577_v52 }
 0x550   : > { %v579_v54 = vmul.f32 1.442695, %v578_v53 }
 0x552   : > { %1852 = vpow2.f32 %v579_v54 }
 0x55c   : > { %v1853_v55 = vpop.eup %1852 }
 0x55d   : > { %v581_v56 = vsel %vm408_vm2, %v1853_v55, 0.0 }
 0x55e   : > { %582 = vadd.xlane.f32.xlu0 %v581_v56 }
 0x574   : > { %662 = vrot.lane.b32.xlu0 %v2288_v27, %s2044_s26  ;;  %s2059_s26 = smov 20  }
 0x5eb   : > { %v583_v58 = vpop.xlane.xlu0 %582 }
 0x5ec   : > { %1854 = vrcp.f32 %v583_v58 }
 0x5ef   : > { %v663_v61 = vpop.permute.xlu0 %662 }
 0x5f6   : > { %v1855_v59 = vpop.eup %1854 }
 0x5f7   : > { %v585_v60 = vmul.f32 %v1855_v59, %v1853_v55 }
 0x5f9   : > { %1676 = vmatmul.mubr.msk.f32.vlgmr.msra.gmra.mrb[6].mxu1 %vm408_vm2, %v585_v60 }
 0x5fa   : > { %1679 = vmatpush3.xpose.msk.msra.mxu1 %vm332_vm1, %v665_v57  ;;  %1680 = vmatprep.mubr.msk.f32.mxu1 %vm2036_vm0, %v2037_v1 }
 0x5fb   : > { %1683 = vmatprep.subr.mxu1 %v2037_v1 }
 0x5fd   : > { %1681 = vmatmul.mubr.msk.f32.vlgmr.msra.gmra.mrb[8].mxu1 %vm332_vm1, %v663_v61 }
 0x5fe   : > { %1685 = vmatprep.mubr.msk.f32.mxu1 %vm2036_vm0, %v2037_v1 }
 0x6cc   : > { %v2327_v62 = vpop.f32.mrb[6].mxu1 }
 0x6cd   : > { %v1677_v63 = vpop.f32.mrb[7].mxu1 }
 0x6d0   : > { %v736_v2 = vpop.f32.mrb[8].mxu1 }
 0x6d1   : > { %v740_v3 = vmul.f32 0.5, %v736_v2  ;;  %v1682_v4 = vpop.f32.mrb[9].mxu1 }
 0x6d3   : > { %v741_v5 = vsel %vm408_vm2, %v740_v3, -inf }
 0x6d4   : > { %742 = vmax.xlane.f32.xlu1 %v741_v5  ;;  %v1356_v5 = vld [vmem:[#allocation7 + $0x10] sm:$0xff] }
 0x6e5   : > { %752 = vrot.lane.b32.xlu1 %v2288_v27, %s2045_s10 }
 0x6e9   : > { %830 = vrot.lane.b32.xlu1 %v2288_v27, %s2046_s24 }
 0x6ed   : > { %828 = vrot.lane.b32.xlu1 %v2288_v27, %s2047_s20  ;;  %s1575_s20 = sshll.u32 %s2107_s19, 7  ;;  %s2060_s19 = smov [#allocation8]  }
 0x761   : > { %v743_v6 = vpop.xlane.xlu1 %742 }
 0x762   : > { %v744_v7 = vsub.f32 %v740_v3, %v743_v6  ;;  %v1355_v3 = vld [vmem:[#allocation7 + $0x8] sm:$0xff] }
 0x764   : > { %v745_v8 = vmul.f32 1.442695, %v744_v7 }
 0x765   : > { %v753_v9 = vpop.permute.xlu1 %752 }
 0x766   : > { %1856 = vpow2.f32 %v745_v8  ;;  %1684 = vmatpush3.msra.mxu1 %v753_v9 }
 0x767   : > { %1688 = vmatprep.subr.mxu1 %v2037_v1 }
 0x769   : > { %v831_v14 = vpop.permute.xlu1 %830 }
 0x76d   : > { %v829_v16 = vpop.permute.xlu1 %828 }
 0x770   : > { %v1857_v10 = vpop.eup %1856 }
 0x771   : > { %v747_v11 = vsel %vm408_vm2, %v1857_v10, 0.0 }
 0x772   : > { %748 = vadd.xlane.f32.xlu0 %v747_v11 }
 0x788   : > { %918 = vrot.lane.b32.xlu0 %v2288_v27, %s2048_s28  ;;  %s241_s28 = scalar_lea.vmem [#allocation8], %s1550_s25  ;;  %s1962_s25 = sshll.u32 %s2060_s19, 4  ;;  %s1963_s25 = int_to_ptr.vmem [resolvable:$false] %s1962_s25 }
 0x78c   : > { %996 = vrot.lane.b32.xlu0 %v2288_v27, %s2049_s11  ;;  %s1453_s11 = sshll.u32 %s241_s28, 4  ;;  %s2391_s11 = int_to_ptr.vmem [resolvable:$true] %s1453_s11 }
 0x78d   : > { %p1965_p7 = scmp.lt.s32.totalorder %s2391_s11, %s1963_s25 }
 0x7ff   : > { %v749_v12 = vpop.xlane.xlu0 %748 }
 0x800   : > { %1858 = vrcp.f32 %v749_v12 }
 0x803   : > { %v919_v17 = vpop.permute.xlu0 %918 }
 0x807   : > { %v997_v31 = vpop.permute.xlu0 %996 }
 0x80a   : > { %v1859_v13 = vpop.eup %1858 }
 0x80b   : > { %v751_v15 = vmul.f32 %v1859_v13, %v1857_v10 }
 0x80d   : > { %1686 = vmatmul.mubr.msk.f32.vlgmr.msra.gmra.mrb[10].mxu1 %vm408_vm2, %v751_v15 }
 0x80e   : > { %1689 = vmatpush3.xpose.msk.msra.mxu1 %vm332_vm1, %v831_v14  ;;  %1690 = vmatprep.mubr.msk.f32.mxu1 %vm2036_vm0, %v2037_v1 }
 0x80f   : > { %1693 = vmatprep.subr.mxu1 %v2037_v1 }
 0x811   : > { %1691 = vmatmul.mubr.msk.f32.vlgmr.msra.gmra.mrb[12].mxu1 %vm332_vm1, %v829_v16 }
 0x812   : > { %1694 = vmatpush3.msra.mxu1 %v919_v17  ;;  %1695 = vmatprep.mubr.msk.f32.mxu1 %vm2036_vm0, %v2037_v1 }
 0x813   : > { %1698 = vmatprep.subr.mxu1 %v2037_v1 }
 0x8e0   : > { %v824_v18 = vpop.f32.mrb[10].mxu1 }
 0x8e1   : > { %v1687_v19 = vpop.f32.mrb[11].mxu1 }
 0x8e2   : > { %v1572_v19 = vld [vmem:[%s2436_s3] ss:$0 sm:$0xff] }
 0x8e4   : > { %v902_v20 = vpop.f32.mrb[12].mxu1 }
 0x8e5   : > { %v906_v21 = vmul.f32 0.5, %v902_v20  ;;  %v1692_v22 = vpop.f32.mrb[13].mxu1 }
 0x8e7   : > { %v907_v23 = vsel %vm408_vm2, %v906_v21, -inf }
 0x8e8   : > { %908 = vmax.xlane.f32.xlu1 %v907_v23 }
 0x8f9   : > { %1162 = vrot.lane.b32.xlu1 %v2288_v27, %s2050_s12 }
 0x975   : > { %v909_v24 = vpop.xlane.xlu1 %908 }
 0x976   : > { %v910_v25 = vsub.f32 %v906_v21, %v909_v24 }
 0x978   : > { %v911_v26 = vmul.f32 1.442695, %v910_v25 }
 0x979   : > { %v1163_v28 = vpop.permute.xlu1 %1162 }
 0x97a   : > { %1860 = vpow2.f32 %v911_v26  ;;  %1709 = vmatpush3.xpose.msk.msra.mxu0 %vm332_vm1, %v1163_v28 }
 0x97b   : > { %1751 = vmatprep.subr.bf16.mxu0 %v2035_v0 }
 0x984   : > { %v1861_v29 = vpop.eup %1860 }
 0x985   : > { %v913_v30 = vsel %vm408_vm2, %v1861_v29, 0.0 }
 0x986   : > { %914 = vadd.xlane.f32.xlu0 %v913_v30 }
 0x99c   : > { %994 = vrot.lane.b32.xlu0 %v2288_v27, %s2051_s7 }
 0x9a0   : > { %1160 = vrot.lane.b32.xlu0 %v2288_v27, %s2052_s8  ;;  %s2389_s8 = scalar_lea.hbm %s2437_s4, %s1575_s20 }
 0xa13   : > { %v915_v32 = vpop.xlane.xlu0 %914 }
 0xa14   : > { %1862 = vrcp.f32 %v915_v32 }
 0xa17   : > { %v995_v33 = vpop.permute.xlu0 %994 }
 0xa1b   : > { %v1161_v34 = vpop.permute.xlu0 %1160 }
 0xa1c   : > { %1711 = vmatmul.mubr.msk.f32.vlgmr.msra.gmra.mrb[2].mxu0 %vm332_vm1, %v1161_v34 }
 0xa1d   : > { %1724 = vmatprep.mubr.msk.f32.mxu0 %vm2036_vm0, %v2037_v1 }
 0xa1e   : > { %v1863_v0 = vpop.eup %1862 }
 0xa1f   : > { %v917_v35 = vmul.f32 %v1863_v0, %v1861_v29 }
 0xa21   : > { %1696 = vmatmul.mubr.msk.f32.vlgmr.msra.gmra.mrb[14].mxu1 %vm408_vm2, %v917_v35 }
 0xa22   : > { %1699 = vmatpush3.xpose.msk.msra.mxu1 %vm332_vm1, %v997_v31  ;;  %1700 = vmatprep.mubr.msk.f32.mxu1 %vm2036_vm0, %v2037_v1 }
 0xa23   : > { %1703 = vmatprep.subr.mxu1 %v2037_v1 }
 0xa25   : > { %1701 = vmatmul.mubr.msk.f32.vlgmr.msra.gmra.mrb[16].mxu1 %vm332_vm1, %v995_v33 }
 0xa26   : > { %1705 = vmatprep.mubr.msk.f32.mxu1 %vm2036_vm0, %v2037_v1 }
 0xaef   : > { %v1234_v36 = vpop.f32.mrb[2].mxu0 }
 0xaf0   : > { %v1238_v37 = vmul.f32 0.5, %v1234_v36  ;;  %v1712_v38 = vpop.f32.mrb[3].mxu0 }
 0xaf2   : > { %v1239_v39 = vsel %vm408_vm2, %v1238_v37, -inf }
 0xaf3   : > { %1240 = vmax.xlane.f32.xlu1 %v1239_v39 }
 0xaf4   : > { %v990_v40 = vpop.f32.mrb[14].mxu1 }
 0xaf5   : > { %v1697_v41 = vpop.f32.mrb[15].mxu1 }
 0xaf8   : > { %v1068_v42 = vpop.f32.mrb[16].mxu1 }
 0xaf9   : > { %v1072_v43 = vmul.f32 0.5, %v1068_v42  ;;  %v1702_v44 = vpop.f32.mrb[17].mxu1 }
 0xafb   : > { %v1073_v45 = vsel %vm408_vm2, %v1072_v43, -inf }
 0xafc   : > { %1074 = vmax.xlane.f32.xlu0 %v1073_v45 }
 0xb04   : > { %1250 = vrot.lane.b32.xlu1 %v2288_v27, %s2053_s21  ;;  %s1440_s21 = scalar_lea.sflag [#allocation4], %s2255_s29 }
 0xb08   : > { %1331 = vrot.lane.b32.xlu1 %v824_v18, %s2054_s23  ;;  %s1958_s23 = scalar_lea.vmem %s2391_s11, 128 }
 0xb09   : > { %p1959_p11 = scmp.ne.s32.totalorder %s2391_s11, %s1958_s23 }
 0xb0b   : > { %p1960_p1 = pnand %p1959_p11, %p2451_p0 }
 0xb0d   : > { %p1961_p3 = pneg %p1960_p1 }
 0xb80   : > { %v1241_v47 = vpop.xlane.xlu1 %1240 }
 0xb81   : > { %v1242_v48 = vsub.f32 %v1238_v37, %v1241_v47 }
 0xb83   : > { %v1243_v49 = vmul.f32 1.442695, %v1242_v48 }
 0xb84   : > { %v1251_v2 = vpop.permute.xlu1 %1250 }
 0xb85   : > { %1864 = vpow2.f32 %v1243_v49 }
 0xb88   : > { %v1332_v11 = vpop.permute.xlu1 %1331 }
 0xb89   : > { %v1075_v50 = vpop.xlane.xlu0 %1074 }
 0xb8a   : > { %v1076_v51 = vsub.f32 %v1072_v43, %v1075_v50 }
 0xb8c   : > { %v1077_v52 = vmul.f32 1.442695, %v1076_v51 }
 0xb8e   : > { %1866 = vpow2.f32 %v1077_v52 }
 0xb8f   : > { %v1865_v53 = vpop.eup %1864 }
 0xb90   : > { %v1245_v54 = vsel %vm408_vm2, %v1865_v53, 0.0 }
 0xb91   : > { %1246 = vadd.xlane.f32.xlu0 %v1245_v54 }
 0xb98   : > { %v1867_v55 = vpop.eup %1866 }
 0xb99   : > { %v1079_v56 = vsel %vm408_vm2, %v1867_v55, 0.0 }
 0xb9a   : > { %1080 = vadd.xlane.f32.xlu0 %v1079_v56 }
 0xbb0   : > { %1084 = vrot.lane.b32.xlu0 %v2288_v27, %s2055_s27  ;;  %s1964_s27 = scalar_lea.vmem %s1963_s25, 256 }
 0xbb1   : > { %p1966_p9 = scmp.lt.s32.totalorder %s1964_s27, %s1958_s23 }
 0xbb3   : > { %p1967_p12 = por %p1966_p9, %p1965_p7 }
 0xbb4   : > { %1327 = vrot.lane.b32.xlu0 %v2327_v62, %s2056_s30  ;;  %v1354_v62 = vld [vmem:[#allocation7] sm:$0xff] }
 0xbb5   : > { %v1752_v4 = vpack.c.bf16 %v1355_v3, %v1354_v62  ;;  %p1968_p2 = pnand %p1967_p12, %p1961_p3 }
 0xbb7   : > { %1753 = vmatpush3.bf16.msra.mxu0 %v1752_v4 }
 0xbb8   : > { %1335 = vrot.lane.b32.xlu0 %v990_v40, %s2057_s5  ;;  %1722 = vmatprep.subr.mxu0 %v2037_v1 }
 0xbbb   : > { %1723 = vmatpush3.msra.mxu0 %v1356_v5 }
 0xc1e   : > { %v1247_v57 = vpop.xlane.xlu0 %1246 }
 0xc27   : > { %v1081_v58 = vpop.xlane.xlu0 %1080 }
 0xc28   : > { %1868 = vrcp.f32 %v1081_v58 }
 0xc29   : > { %1870 = vrcp.f32 %v1247_v57 }
 0xc2b   : > { %v1085_v59 = vpop.permute.xlu0 %1084 }
 0xc2c   : > { %1704 = vmatpush3.msra.mxu1 %v1085_v59 }
 0xc2d   : > { %1713 = vmatprep.subr.mxu1 %v2037_v1 }
 0xc2f   : > { %v1328_v10 = vpop.permute.xlu0 %1327 }
 0xc30   : > { %v1346_v12 = vsel %vm332_vm1, %v2314_v46, %v1328_v10 }
 0xc31   : > { %v1347_v14 = vsel %vm408_vm2, %v1346_v12, %v1332_v11 }
 0xc32   : > { %v1869_v60 = vpop.eup %1868 }
 0xc33   : > { %v1083_v61 = vmul.f32 %v1869_v60, %v1867_v55  ;;  %v1871_v63 = vpop.eup %1870  ;;  %v1336_v13 = vpop.permute.xlu0 %1335 }
 0xc34   : > { %v1249_v27 = vmul.f32 %v1871_v63, %v1865_v53  ;;  %v1349_v15 = vsel %vm1348_vm3, %v1347_v14, %v1336_v13 }
 0xc35   : > { %1706 = vmatmul.mubr.msk.f32.vlgmr.msra.gmra.mrb[18].mxu1 %vm408_vm2, %v1083_v61 }
 0xc36   : > { %1714 = vmatpush3.msra.mxu1 %v1251_v2  ;;  %1715 = vmatprep.mubr.msk.f32.mxu1 %vm2036_vm0, %v2037_v1 }
 0xc39   : > { %1716 = vmatmul.mubr.msk.f32.vlgmr.msra.gmra.mrb[20].mxu1 %vm408_vm2, %v1249_v27 }
 0xd08   : > { %v1156_v6 = vpop.f32.mrb[18].mxu1 }
 0xd09   : > { %1339 = vrot.lane.b32.xlu1 %v1156_v6, %s2058_s6  ;;  %v1707_v7 = vpop.f32.mrb[19].mxu1 }
 0xd0c   : > { %v1322_v8 = vpop.f32.mrb[20].mxu1 }
 0xd0d   : > { %1343 = vrot.lane.b32.xlu0 %v1322_v8, %s2059_s26  ;;  %v1717_v9 = vpop.f32.mrb[21].mxu1 }
 0xd7b   : > { %v1340_v1 = vpop.permute.xlu1 %1339 }
 0xd7c   : > { %v1351_v16 = vsel %vm1350_vm4, %v1349_v15, %v1340_v1 }
 0xd7f   : > { %v1344_v17 = vpop.permute.xlu0 %1343 }
 0xd80   : > { %v1353_v18 = vsel %vm1352_vm5, %v1351_v16, %v1344_v17 }
 0xd81   : > { %1725 = vmatmul.mubr.msk.f32.vlgmr.msra.gmra.mrb[4].mxu0 %vm1364_vm6, %v1353_v18 }
 0xe54   : > { %v1434_v46 = vpop.f32.mrb[4].mxu0 }
 0xe55   : > { %v1435_v20 = vadd.f32 %v1572_v19, %v1434_v46  ;;  %v1726_v21 = vpop.f32.mrb[5].mxu0 }
 0xe57   : > { %1438 = vst [vmem:[%s241_s28] sm:$0xff] %v1435_v20 }
 0xe58   : > { %1971 = shalt.err (!%p1968_p2)
}
 0xe59   : > { %s1972_s29 = scalar_lea.hbm %s2389_s8, 128  ;;  %s1976_s6 = scalar_lea.hbm %s2437_s4, 256 }
 0xe5a   : > { %p1973_p13 = scmp.ne.s32.totalorder %s2389_s8, %s1972_s29  ;;  %p1977_p4 = scmp.lt.u32.totalorder %s2389_s8, %s2437_s4 }
 0xe5b   : > { %p1978_p5 = scmp.lt.u32.totalorder %s1976_s6, %s1972_s29  ;;  %p1980_p11 = scmp.lt.u32.totalorder %s1972_s29, %s2389_s8 }
 0xe5c   : > { %p1974_p6 = pnand %p1973_p13, %p2451_p0 }
 0xe5d   : > { %p1979_p8 = por %p1978_p5, %p1977_p4 }
 0xe5e   : > { %p1975_p10 = pneg %p1974_p6 }
 0xe5f   : > { %p1981_p1 = por %p1980_p11, %p1979_p8 }
 0xe61   : > { %p1982_p3 = pnand %p1981_p1, %p1975_p10 }
 0xe63   : > { %1985 = shalt.err (!%p1982_p3)
}
 0xe64   : > { %1764 = dma.vmem_to_hbm [thread:$0]  (%p2451_p0), %s2391_s11, 128, %s2389_s8, %s1440_s21  }
 0xe65 PF: > { %s1465_s24 = sand.u32 1, %s2016_s15   ;;  %p2452_p7 = scmp.ne.s32.totalorder %s2442_s22, 0 }
 0xe66   : > { %p2453_p9 = scmp.ge.s32.totalorder %s2028_s18, 2  ;;  %s1466_s20 = scalar_lea.sflag [#allocation4], %s1465_s24 }
 0xe68   : > { %p1778_p12 = pnand %p2453_p9, %p2452_p7 }
 0xe6a   : > { %2011 = dma.done.wait (!%p1778_p12), %s1466_s20, 128  }
 0xe6b   : > { %2013 = vsyncadd (!%p1778_p12), %s1466_s20, 4294967168  ;;  %p18_p2 = scmp.ge.s32.totalorder %s2196_s9, 4   ;;  %s2454_s15 = smov %s2020_s16 }
 0xe6c   : > { %s2455_s16 = smov %s2024_s17  ;;  %s2456_s17 = smov %s2212_s14 }
 0xe6d   : > { %s2457_s18 = smov %s2196_s9  ;;  %20 = sbr.rel (!%p18_p2) target bundleno = 6 (0x6), region = 89 }
 0xe74   :  { %1471 = vsyncpa [#allocation3], 1 }
 0xe75   :  { %1473 = vsyncpa [#allocation3 + $0x1], 1 }
 0xe76   :  { %1474 = vsyncpa [#allocation6], 1 }
 0xe77   :  { %1475 = vsyncpa [#allocation4], 1 }
 0xe78   :  { %1477 = vsyncpa [#allocation4 + $0x1], 1 }

</bundles_post_ra>
